<compile_context>
chip_gen: v5e
topology: v5e:2x2
jax: 0.10.0
libtpu: 0.0.40
codegen_flags: <defaults>
</compile_context>

<pallas_src>
import functools

import jax
import jax.numpy as jnp
from jax.experimental import pallas as pl
from jax.experimental.pallas import tpu as pltpu


def _round_up(x, m):
    return ((x + m - 1) // m) * m


def _bilinear_kernel(x_ref, w_ref, b_ref, o_ref):
    # x_ref: (TN, C)      f32   tile of input rows
    # w_ref: (C, C*TO)    bf16  weight slab for this output tile:
    #                           w[i, j*TO + oo] = W[o_base + oo, i, j]
    # b_ref: (1, TO)      f32   bias tile
    # o_ref: (TN, TO)     f32   output tile (lane-dense, TO % 128 == 0)
    x = x_ref[...]                                        # (TN, C) f32
    tn, c = x.shape
    to = o_ref.shape[-1]

    # MXU: xw[n, j*TO + oo] = sum_i x[n, i] * W[o_base + oo, i, j]
    xw = jnp.dot(x.astype(jnp.bfloat16), w_ref[...],
                 preferred_element_type=jnp.float32)      # (TN, C*TO) f32

    # f32 VPU epilogue: y[n, oo] = sum_j xw[n, j*TO + oo] * x[n, j] + b[oo]
    # Static, lane-aligned chunks -> no relayout of xw.
    acc = jnp.zeros((tn, to), jnp.float32)
    for j in range(c):
        acc = acc + xw[:, j * to:(j + 1) * to] * x[:, j:j + 1]

    o_ref[...] = (acc + b_ref[...]).astype(o_ref.dtype)


def prepare_bilinear_params(weight, bias, *, tile_o=128):
    """One-time (parameter-load time) repack of the nn.Bilinear parameters.

    weight: (O, C, C) f32, bias: (O,) f32.  Returns:
      wt: (O_pad//tile_o, C, C*tile_o) bf16,  wt[t, i, j*tile_o+oo] = W[t*tile_o+oo, i, j]
      b2: (1, O_pad) f32
    Hoist this out of the per-forward-call path.
    """
    o, c, c2 = weight.shape
    assert c == c2, "nn.Bilinear(x, x) requires in_planes1 == in_planes2"
    o_pad = _round_up(o, tile_o)
    w = jnp.pad(weight, ((0, o_pad - o), (0, 0), (0, 0)))
    wt = w.reshape(o_pad // tile_o, tile_o, c, c)     # (T, oo, i, j)
    wt = jnp.transpose(wt, (0, 2, 3, 1))              # (T, i, j, oo)
    wt = wt.reshape(o_pad // tile_o, c, c * tile_o)   # last axis = j*tile_o + oo
    wt = wt.astype(jnp.bfloat16)
    b2 = jnp.pad(bias, (0, o_pad - o)).reshape(1, o_pad).astype(jnp.float32)
    return wt, b2


def bilinear_feedforward_prepared(x, wt, b2, out_features, *, tile_n=128):
    """x: (N, C) f32; wt/b2 from prepare_bilinear_params. Returns (N, out_features)."""
    n, c = x.shape
    n_o_tiles, c_w, cto = wt.shape
    assert c_w == c
    tile_o = cto // c
    o_pad = n_o_tiles * tile_o
    assert b2.shape == (1, o_pad)

    n_pad = _round_up(n, tile_n)
    x_p = jnp.pad(x, ((0, n_pad - n), (0, 0))) if n_pad != n else x
    grid = (n_o_tiles, n_pad // tile_n)   # O tiles OUTER: weight re-DMA'd least often.

    flops = 2 * n_pad * o_pad * c * c + 2 * n_pad * o_pad * c
    bytes_accessed = x_p.size * 4 + wt.size * 2 + b2.size * 4 + n_pad * o_pad * 4

    # VMEM budget: double-buffered I/O tiles + the (un-double-buffered) xw
    # intermediate, with 2x headroom; stays within v7x's 64 MiB per TC.
    vmem_est = (2 * (tile_n * c * 4 + c * c * tile_o * 2 + tile_o * 4
                     + tile_n * tile_o * 4)
                + tile_n * c * tile_o * 4)
    vmem_limit = int(min(64 * 1024 * 1024, max(2 * vmem_est, 16 * 1024 * 1024)))

    out = pl.pallas_call(
        _bilinear_kernel,
        out_shape=jax.ShapeDtypeStruct((n_pad, o_pad), x.dtype),
        grid_spec=pltpu.PrefetchScalarGridSpec(
            num_scalar_prefetch=0,
            grid=grid,
            in_specs=[
                pl.BlockSpec((tile_n, c), lambda t, i: (i, 0)),
                pl.BlockSpec((None, c, c * tile_o), lambda t, i: (t, 0, 0)),
                pl.BlockSpec((1, tile_o), lambda t, i: (0, t)),
            ],
            out_specs=pl.BlockSpec((tile_n, tile_o), lambda t, i: (i, t)),
        ),
        compiler_params=pltpu.CompilerParams(
            dimension_semantics=("parallel", "parallel"),
            vmem_limit_bytes=vmem_limit),
        cost_estimate=pl.CostEstimate(
            flops=flops, transcendentals=0, bytes_accessed=bytes_accessed),
    )(x_p, wt, b2)

    return out[:n, :out_features]


def bilinear_feedforward(x, weight, bias, *, tile_n=128, tile_o=128):
    """Convenience wrapper; for repeated calls hoist prepare_bilinear_params."""
    wt, b2 = prepare_bilinear_params(weight, bias, tile_o=tile_o)
    return bilinear_feedforward_prepared(x, wt, b2, weight.shape[0], tile_n=tile_n)


if __name__ == "__main__":
    # Small deterministic example consistent with the module
    # (in_planes1 == in_planes2 == C since both bilinear inputs are x).
    N, C, O = 16, 8, 32

    key = jax.random.PRNGKey(0)
    kx, kw, kb = jax.random.split(key, 3)

    # nn.Bilinear-style uniform(-k, k) init, k = 1/sqrt(in_planes1).
    k = 1.0 / jnp.sqrt(jnp.float32(C))
    weight = jax.random.uniform(kw, (O, C, C), jnp.float32, -k, k)
    bias = jax.random.uniform(kb, (O,), jnp.float32, -k, k)
    x = jax.random.normal(kx, (N, C), jnp.float32)

    # Hoisted (parameter-load-time) weight repack, reused across forward calls.
    wt, b2 = prepare_bilinear_params(weight, bias, tile_o=128)
    fwd = jax.jit(functools.partial(bilinear_feedforward_prepared,
                                    out_features=O, tile_n=128))
    y = jax.block_until_ready(fwd(x, wt, b2))

    # Reference mirroring the kernel's precision: bf16 MXU inputs with f32
    # accumulation, f32 epilogue (x stays f32 there).
    xq = x.astype(jnp.bfloat16).astype(jnp.float32)
    wq = weight.astype(jnp.bfloat16).astype(jnp.float32)
    xw_ref = jnp.einsum("ni,oij->noj", xq, wq,
                        precision=jax.lax.Precision.HIGHEST)
    y_ref = jnp.sum(xw_ref * x[:, None, :], axis=-1) + bias

    assert y.shape == (N, O)
    assert jnp.allclose(y, y_ref, atol=2e-3, rtol=2e-3), \
        float(jnp.max(jnp.abs(y - y_ref)))

    print("KERNEL_OK")
</pallas_src>

<mosaic_0001>
module attributes {stable_mosaic.version = 11 : i64} {
  func.func @_bilinear_kernel(%arg0: i32, %arg1: i32, %arg2: memref<128x8xf32, #tpu.memory_space<vmem>>, %arg3: memref<1x8x1024xbf16, #tpu.memory_space<vmem>>, %arg4: memref<1x128xf32, #tpu.memory_space<vmem>>, %arg5: memref<128x128xf32, #tpu.memory_space<vmem>>) attributes {dimension_semantics = [#tpu.dimension_semantics<parallel>, #tpu.dimension_semantics<parallel>], iteration_bounds = array<i64: 1, 1>, scalar_prefetch = 0 : i64, scratch_operands = 0 : i64, tpu.core_type = #tpu.core_type<tc>, window_params = [{transform_indices = @transform_0, window_bounds = array<i64: 128, 8>}, {transform_indices = @transform_1, window_bounds = array<i64: 1, 8, 1024>}, {transform_indices = @transform_2, window_bounds = array<i64: 1, 128>}, {transform_indices = @transform_3, window_bounds = array<i64: 128, 128>}]} {
    %c0 = arith.constant 0 : index
    %c0_0 = arith.constant 0 : index
    %0 = vector.load %arg2[%c0, %c0_0] : memref<128x8xf32, #tpu.memory_space<vmem>>, vector<128x8xf32>
    %1 = arith.truncf %0 : vector<128x8xf32> to vector<128x8xbf16>
    %c0_1 = arith.constant 0 : index
    %c0_2 = arith.constant 0 : index
    %c0_3 = arith.constant 0 : index
    %2 = vector.load %arg3[%c0_1, %c0_2, %c0_3] : memref<1x8x1024xbf16, #tpu.memory_space<vmem>>, vector<1x8x1024xbf16>
    %3 = vector.shape_cast %2 : vector<1x8x1024xbf16> to vector<8x1024xbf16>
    %cst = arith.constant dense<0.000000e+00> : vector<128x1024xf32>
    %4 = tpu.matmul %1, %3, %cst {dimension_numbers = #tpu.dot_dimension_numbers<[1], [0], [0], [1], [0, 0, 1, 1], [], []>} : vector<128x8xbf16>, vector<8x1024xbf16>, vector<128x1024xf32> -> vector<128x1024xf32>
    %cst_4 = arith.constant 0.000000e+00 : f32
    %5 = vector.broadcast %cst_4 : f32 to vector<128x128xf32>
    %6 = vector.extract_strided_slice %4 {offsets = [0, 0], sizes = [128, 128], strides = [1, 1]} : vector<128x1024xf32> to vector<128x128xf32>
    %7 = vector.extract_strided_slice %0 {offsets = [0, 0], sizes = [128, 1], strides = [1, 1]} : vector<128x8xf32> to vector<128x1xf32>
    %8 = vector.broadcast %7 : vector<128x1xf32> to vector<128x128xf32>
    %9 = arith.mulf %6, %8 : vector<128x128xf32>
    %10 = arith.addf %5, %9 : vector<128x128xf32>
    %11 = vector.extract_strided_slice %4 {offsets = [0, 128], sizes = [128, 128], strides = [1, 1]} : vector<128x1024xf32> to vector<128x128xf32>
    %12 = vector.extract_strided_slice %0 {offsets = [0, 1], sizes = [128, 1], strides = [1, 1]} : vector<128x8xf32> to vector<128x1xf32>
    %13 = vector.broadcast %12 : vector<128x1xf32> to vector<128x128xf32>
    %14 = arith.mulf %11, %13 : vector<128x128xf32>
    %15 = arith.addf %10, %14 : vector<128x128xf32>
    %16 = vector.extract_strided_slice %4 {offsets = [0, 256], sizes = [128, 128], strides = [1, 1]} : vector<128x1024xf32> to vector<128x128xf32>
    %17 = vector.extract_strided_slice %0 {offsets = [0, 2], sizes = [128, 1], strides = [1, 1]} : vector<128x8xf32> to vector<128x1xf32>
    %18 = vector.broadcast %17 : vector<128x1xf32> to vector<128x128xf32>
    %19 = arith.mulf %16, %18 : vector<128x128xf32>
    %20 = arith.addf %15, %19 : vector<128x128xf32>
    %21 = vector.extract_strided_slice %4 {offsets = [0, 384], sizes = [128, 128], strides = [1, 1]} : vector<128x1024xf32> to vector<128x128xf32>
    %22 = vector.extract_strided_slice %0 {offsets = [0, 3], sizes = [128, 1], strides = [1, 1]} : vector<128x8xf32> to vector<128x1xf32>
    %23 = vector.broadcast %22 : vector<128x1xf32> to vector<128x128xf32>
    %24 = arith.mulf %21, %23 : vector<128x128xf32>
    %25 = arith.addf %20, %24 : vector<128x128xf32>
    %26 = vector.extract_strided_slice %4 {offsets = [0, 512], sizes = [128, 128], strides = [1, 1]} : vector<128x1024xf32> to vector<128x128xf32>
    %27 = vector.extract_strided_slice %0 {offsets = [0, 4], sizes = [128, 1], strides = [1, 1]} : vector<128x8xf32> to vector<128x1xf32>
    %28 = vector.broadcast %27 : vector<128x1xf32> to vector<128x128xf32>
    %29 = arith.mulf %26, %28 : vector<128x128xf32>
    %30 = arith.addf %25, %29 : vector<128x128xf32>
    %31 = vector.extract_strided_slice %4 {offsets = [0, 640], sizes = [128, 128], strides = [1, 1]} : vector<128x1024xf32> to vector<128x128xf32>
    %32 = vector.extract_strided_slice %0 {offsets = [0, 5], sizes = [128, 1], strides = [1, 1]} : vector<128x8xf32> to vector<128x1xf32>
    %33 = vector.broadcast %32 : vector<128x1xf32> to vector<128x128xf32>
    %34 = arith.mulf %31, %33 : vector<128x128xf32>
    %35 = arith.addf %30, %34 : vector<128x128xf32>
    %36 = vector.extract_strided_slice %4 {offsets = [0, 768], sizes = [128, 128], strides = [1, 1]} : vector<128x1024xf32> to vector<128x128xf32>
    %37 = vector.extract_strided_slice %0 {offsets = [0, 6], sizes = [128, 1], strides = [1, 1]} : vector<128x8xf32> to vector<128x1xf32>
    %38 = vector.broadcast %37 : vector<128x1xf32> to vector<128x128xf32>
    %39 = arith.mulf %36, %38 : vector<128x128xf32>
    %40 = arith.addf %35, %39 : vector<128x128xf32>
    %41 = vector.extract_strided_slice %4 {offsets = [0, 896], sizes = [128, 128], strides = [1, 1]} : vector<128x1024xf32> to vector<128x128xf32>
    %42 = vector.extract_strided_slice %0 {offsets = [0, 7], sizes = [128, 1], strides = [1, 1]} : vector<128x8xf32> to vector<128x1xf32>
    %43 = vector.broadcast %42 : vector<128x1xf32> to vector<128x128xf32>
    %44 = arith.mulf %41, %43 : vector<128x128xf32>
    %45 = arith.addf %40, %44 : vector<128x128xf32>
    %c0_5 = arith.constant 0 : index
    %c0_6 = arith.constant 0 : index
    %46 = vector.load %arg4[%c0_5, %c0_6] : memref<1x128xf32, #tpu.memory_space<vmem>>, vector<1x128xf32>
    %47 = vector.broadcast %46 : vector<1x128xf32> to vector<128x128xf32>
    %48 = arith.addf %45, %47 : vector<128x128xf32>
    %c0_7 = arith.constant 0 : index
    %c0_8 = arith.constant 0 : index
    %49 = vector.load %arg5[%c0_7, %c0_8] : memref<128x128xf32, #tpu.memory_space<vmem>>, vector<128x128xf32>
    tpu.vector_store %arg5[%c0_7, %c0_8], %48 {strides = array<i32>} : memref<128x128xf32, #tpu.memory_space<vmem>>, vector<128x128xf32>,
    return
  }
  func.func @transform_0(%arg0: i32, %arg1: i32) -> (i32, i32) {
    %c0_i32 = arith.constant 0 : i32
    %c0_i32_0 = arith.constant 0 : i32
    return %arg1, %c0_i32 : i32, i32
  }
  func.func @transform_1(%arg0: i32, %arg1: i32) -> (i32, i32, i32) {
    %c0_i32 = arith.constant 0 : i32
    %c0_i32_0 = arith.constant 0 : i32
    %c0_i32_1 = arith.constant 0 : i32
    return %arg0, %c0_i32, %c0_i32_0 : i32, i32, i32
  }
  func.func @transform_2(%arg0: i32, %arg1: i32) -> (i32, i32) {
    %c0_i32 = arith.constant 0 : i32
    %c0_i32_0 = arith.constant 0 : i32
    return %c0_i32, %arg0 : i32, i32
  }
  func.func @transform_3(%arg0: i32, %arg1: i32) -> (i32, i32) {
    %c0_i32 = arith.constant 0 : i32
    return %arg1, %arg0 : i32, i32
  }
}

</mosaic_0001>

<bundles_post_ra>
// kernel: bilinear_feedforward_prepared.1
= control target key start
LH: loop header
LB: loop body
LE: loop exit
PB: predicated region body
PF: predicated region fallthrough
CT: control target
= control target key end

     0   :  { %v1438_v0 = vmov 0   ;;  %vm88_vm0 = vcmask 1043456   ;;  %vm63_vm1 = vcmask 64512   ;;  %v1439_v34 = vmov 1   ;;  %s2373_s0 = inlined_call_operand.vmem [shape: f32[128,8], index: 0, kind: input, shape index: {}]   ;;  %s2374_s1 = inlined_call_operand.vmem [shape: bf16[1,8,1024], index: 1, kind: input, shape index: {}]   ;;  %s2375_s2 = inlined_call_operand.vmem [shape: f32[1,128], index: 2, kind: input, shape index: {}]   ;;  %s2376_s3 = inlined_call_operand.vmem [shape: f32[128,128], index: 3, kind: output, shape index: {}]  }
   0x1   :  { %1403 = vset.pattern.permute.xlu2 %v1438_v0  ;;  %1402 = vset.pattern.permute.xlu1 %v1438_v0  ;;  %v1469_v1 = vld [vmem:[%s2373_s0 + $0x20] sm:$0xff]  ;;  %v1474_v2 = vld [vmem:[%s2373_s0 + $0x10] sm:$0xff]  ;;  %v40_v5 = vld [vmem:[%s2374_s1 + $0x8] sm:$0xff]  ;;  %v1440_v51 = vmov 2  }
   0x2   :  { %v1479_v3 = vld [vmem:[%s2373_s0] sm:$0xff]  ;;  %1401 = vset.pattern.permute.xlu0 %v1438_v0  ;;  %527 = vperm.xlu2 %1403, %v1469_v1   ;;  %v49_v8 = vunpack.c.l.b16 %v40_v5  ;;  %v50_v9 = vunpack.c.h.b16 %v40_v5  ;;  %v1493_v13 = vld [vmem:[%s2373_s0 + $0x8] sm:$0xff]  ;;  %v1507_v20 = vld [vmem:[%s2373_s0 + $0x18] sm:$0xff]  ;;  %v1441_v0 = vmov 3  }
   0x3   :  { %v39_v4 = vld [vmem:[%s2374_s1] sm:$0xff]  ;;  %517 = vperm.xlu1 %1402, %v1474_v2   ;;  %507 = vperm.xlu0 %1401, %v1479_v3   ;;  %v1501_v18 = vld [vmem:[%s2373_s0 + $0x28] sm:$0xff]  ;;  %v1511_v21 = vpack.c.bf16 %v1493_v13, %v1479_v3  ;;  %v1532_v23 = vld [vmem:[%s2373_s0 + $0x38] sm:$0xff]  ;;  %v1559_v28 = vpack.c.bf16 %v1507_v20, %v1474_v2 }
   0x4   :  { %v47_v6 = vunpack.c.l.b16 %v39_v4  ;;  %v48_v7 = vunpack.c.h.b16 %v39_v4  ;;  %v57_v12 = vpack.c.b16 %v49_v8, %v49_v8  ;;  %v58_v14 = vpack.c.b16 %v50_v9, %v50_v9  ;;  %v1527_v22 = vld [vmem:[%s2373_s0 + $0x40] sm:$0xff]  ;;  %v1537_v24 = vld [vmem:[%s2373_s0 + $0x30] sm:$0xff]  ;;  %v1545_v25 = vld [vmem:[%s2373_s0 + $0x58] sm:$0xff] }
   0x5   :  { %v1550_v26 = vld [vmem:[%s2373_s0 + $0x50] sm:$0xff]  ;;  %v1555_v27 = vld [vmem:[%s2373_s0 + $0x48] sm:$0xff]  ;;  %v1585_v31 = vld [vmem:[%s2373_s0 + $0x60] sm:$0xff]  ;;  %v1597_v33 = vpack.c.bf16 %v1501_v18, %v1469_v1  ;;  %v1615_v35 = vpack.c.bf16 %v1532_v23, %v1537_v24 }
   0x6   :  { %v55_v10 = vpack.c.b16 %v47_v6, %v47_v6  ;;  %v56_v11 = vpack.c.b16 %v48_v7, %v48_v7  ;;  %v96_v17 = vsel %vm88_vm0, %v57_v12, 0  ;;  %v99_v19 = vsel %vm88_vm0, %v58_v14, 0  ;;  %v1575_v29 = vld [vmem:[%s2373_s0 + $0x70] sm:$0xff]  ;;  %v1580_v30 = vld [vmem:[%s2373_s0 + $0x68] sm:$0xff]  ;;  %v1593_v32 = vld [vmem:[%s2373_s0 + $0x78] sm:$0xff] }
   0x7   :  { %218 = vmatpush.bf16.msra.mxu2 %v96_v17  ;;  %267 = vmatpush.bf16.msra.mxu3 %v99_v19  ;;  %2379 = vst [vmem:[#allocation2_spill] sm:$0xff] %v1580_v30  ;;  %v42_v36 = vld [vmem:[%s2374_s1 + $0x18] sm:$0xff]  ;;  %v41_v37 = vld [vmem:[%s2374_s1 + $0x10] sm:$0xff]  ;;  %v1643_v50 = vpack.c.bf16 %v1555_v27, %v1527_v22  ;;  %v1661_v52 = vpack.c.bf16 %v1545_v25, %v1550_v26 }
   0x8   :  { %v90_v15 = vsel %vm88_vm0, %v55_v10, 0  ;;  %v93_v16 = vsel %vm88_vm0, %v56_v11, 0  ;;  %v53_v38 = vunpack.c.l.b16 %v42_v36  ;;  %v51_v39 = vunpack.c.l.b16 %v41_v37 }
   0x9   :  { %120 = vmatpush.bf16.msra.mxu0 %v90_v15  ;;  %169 = vmatpush.bf16.msra.mxu1 %v93_v16  ;;  %v54_v40 = vunpack.c.h.b16 %v42_v36  ;;  %v52_v41 = vunpack.c.h.b16 %v41_v37  ;;  %v1683_v55 = vpack.c.bf16 %v1580_v30, %v1585_v31  ;;  %v1705_v60 = vpack.c.bf16 %v1593_v32, %v1575_v29 }
   0xa   :  { %532 = vperm.xlu2 %1403, %v1501_v18   ;;  %1345 = vmatmul.msk.bf16.vlgmr.msra.gmra.mxu2 %vm63_vm1, %v1511_v21  ;;  %v61_v42 = vpack.c.b16 %v53_v38, %v53_v38  ;;  %v59_v43 = vpack.c.b16 %v51_v39, %v51_v39 }
   0xb   :  { %522 = vperm.xlu1 %1402, %v1507_v20   ;;  %512 = vperm.xlu0 %1401, %v1493_v13   ;;  %v62_v44 = vpack.c.b16 %v54_v40, %v54_v40  ;;  %v60_v45 = vpack.c.b16 %v52_v41, %v52_v41 }
   0xc   :  { %1329 = vmatmul.msk.bf16.vlgmr.msra.gmra.mxu0 %vm63_vm1, %v1511_v21  ;;  %1337 = vmatmul.msk.bf16.vlgmr.msra.gmra.mxu1 %vm63_vm1, %v1511_v21  ;;  %v108_v46 = vsel %vm88_vm0, %v61_v42, 0  ;;  %v102_v47 = vsel %vm88_vm0, %v59_v43, 0 }
   0xd   :  { %1353 = vmatmul.msk.bf16.vlgmr.msra.gmra.mxu3 %vm63_vm1, %v1511_v21  ;;  %v111_v48 = vsel %vm88_vm0, %v62_v44, 0  ;;  %414 = vmatpush.bf16.msrb.mxu2 %v108_v46  ;;  %v105_v49 = vsel %vm88_vm0, %v60_v45, 0 }
   0xe   :  { %316 = vmatpush.bf16.msrb.mxu0 %v102_v47  ;;  %463 = vmatpush.bf16.msrb.mxu3 %v111_v48 }
   0xf   :  { %365 = vmatpush.bf16.msrb.mxu1 %v105_v49 }
  0x12   :  { %547 = vperm.xlu2 %1403, %v1527_v22  }
  0x13   :  { %542 = vperm.xlu1 %1402, %v1532_v23   ;;  %537 = vperm.xlu0 %1401, %v1537_v24  }
  0x1a   :  { %562 = vperm.xlu2 %1403, %v1545_v25   ;;  %1346 = vmatmul.msk.bf16.gmra.mxu2 %vm63_vm1, %v1559_v28 }
  0x1b   :  { %557 = vperm.xlu1 %1402, %v1550_v26   ;;  %552 = vperm.xlu0 %1401, %v1555_v27  }
  0x1c   :  { %1330 = vmatmul.msk.bf16.gmra.mxu0 %vm63_vm1, %v1559_v28  ;;  %1338 = vmatmul.msk.bf16.gmra.mxu1 %vm63_vm1, %v1559_v28 }
  0x1d   :  { %1354 = vmatmul.msk.bf16.gmra.mxu3 %vm63_vm1, %v1559_v28 }
  0x22   :  { %577 = vperm.xlu2 %1403, %v1575_v29  }
  0x23   :  { %572 = vperm.xlu1 %1402, %v1580_v30   ;;  %567 = vperm.xlu0 %1401, %v1585_v31  }
  0x2a   :  { %1405 = vset.pattern.permute.xlu2 %v1439_v34  ;;  %1347 = vmatmul.msk.bf16.gmra.mxu2 %vm63_vm1, %v1597_v33 }
  0x2b   :  { %1404 = vset.pattern.permute.xlu1 %v1439_v34  ;;  %582 = vperm.xlu0 %1401, %v1593_v32  }
  0x2c   :  { %1331 = vmatmul.msk.bf16.gmra.mxu0 %vm63_vm1, %v1597_v33  ;;  %1339 = vmatmul.msk.bf16.gmra.mxu1 %vm63_vm1, %v1597_v33 }
  0x2d   :  { %622 = vperm.xlu2 %1405, %v1493_v13   ;;  %618 = vperm.xlu1 %1404, %v1479_v3  }
  0x2e   :  { %1355 = vmatmul.msk.bf16.gmra.mxu3 %vm63_vm1, %v1597_v33 }
  0x33   :  { %1406 = vset.pattern.permute.xlu0 %v1439_v34 }
  0x34   :  { %626 = vperm.xlu0 %1406, %v1474_v2  }
  0x35   :  { %634 = vperm.xlu2 %1405, %v1469_v1   ;;  %630 = vperm.xlu1 %1404, %v1507_v20  }
  0x3a   :  { %1348 = vmatmul.msk.bf16.gmra.mxu2 %vm63_vm1, %v1615_v35 }
  0x3c   :  { %1332 = vmatmul.msk.bf16.gmra.mxu0 %vm63_vm1, %v1615_v35  ;;  %1340 = vmatmul.msk.bf16.gmra.mxu1 %vm63_vm1, %v1615_v35 }
  0x3d   :  { %642 = vperm.xlu2 %1405, %v1537_v24   ;;  %638 = vperm.xlu1 %1404, %v1501_v18  }
  0x3e   :  { %646 = vperm.xlu0 %1406, %v1532_v23   ;;  %1356 = vmatmul.msk.bf16.gmra.mxu3 %vm63_vm1, %v1615_v35 }
  0x45   :  { %654 = vperm.xlu2 %1405, %v1555_v27   ;;  %650 = vperm.xlu1 %1404, %v1527_v22  }
  0x46   :  { %658 = vperm.xlu0 %1406, %v1550_v26  }
  0x4a   :  { %1349 = vmatmul.msk.bf16.gmra.mxu2 %vm63_vm1, %v1643_v50 }
  0x4c   :  { %1333 = vmatmul.msk.bf16.gmra.mxu0 %vm63_vm1, %v1643_v50  ;;  %1341 = vmatmul.msk.bf16.gmra.mxu1 %vm63_vm1, %v1643_v50 }
  0x4d   :  { %666 = vperm.xlu2 %1405, %v1585_v31   ;;  %662 = vperm.xlu1 %1404, %v1545_v25  }
  0x4e   :  { %670 = vperm.xlu0 %1406, %v1580_v30   ;;  %1357 = vmatmul.msk.bf16.gmra.mxu3 %vm63_vm1, %v1643_v50 }
  0x55   :  { %678 = vperm.xlu2 %1405, %v1593_v32   ;;  %674 = vperm.xlu1 %1404, %v1575_v29  }
  0x56   :  { %1407 = vset.pattern.permute.xlu0 %v1440_v51 }
  0x57   :  { %714 = vperm.xlu0 %1407, %v1479_v3  }
  0x5a   :  { %1350 = vmatmul.msk.bf16.gmra.mxu2 %vm63_vm1, %v1661_v52 }
  0x5c   :  { %1334 = vmatmul.msk.bf16.gmra.mxu0 %vm63_vm1, %v1661_v52  ;;  %1342 = vmatmul.msk.bf16.gmra.mxu1 %vm63_vm1, %v1661_v52  ;;  %v1667_v53 = vpop.permute.xlu2 %527 }
  0x5d   :  { %1409 = vset.pattern.permute.xlu2 %v1440_v51  ;;  %1408 = vset.pattern.permute.xlu1 %v1440_v51 }
  0x5e   :  { %722 = vperm.xlu2 %1409, %v1474_v2   ;;  %718 = vperm.xlu1 %1408, %v1493_v13  }
  0x5f   :  { %734 = vperm.xlu0 %1407, %v1501_v18   ;;  %1358 = vmatmul.msk.bf16.gmra.mxu3 %vm63_vm1, %v1661_v52 }
  0x64   :  { %v1676_v54 = vpop.permute.xlu2 %532 }
  0x66   :  { %730 = vperm.xlu2 %1409, %v1469_v1   ;;  %726 = vperm.xlu1 %1408, %v1507_v20  }
  0x67   :  { %746 = vperm.xlu0 %1407, %v1527_v22  }
  0x6a   :  { %1351 = vmatmul.msk.bf16.gmra.mxu2 %vm63_vm1, %v1683_v55 }
  0x6c   :  { %1335 = vmatmul.msk.bf16.gmra.mxu0 %vm63_vm1, %v1683_v55  ;;  %1343 = vmatmul.msk.bf16.gmra.mxu1 %vm63_vm1, %v1683_v55  ;;  %v1689_v56 = vpop.permute.xlu2 %547 }
  0x6e   :  { %742 = vperm.xlu2 %1409, %v1532_v23   ;;  %738 = vperm.xlu1 %1408, %v1537_v24  }
  0x6f   :  { %758 = vperm.xlu0 %1407, %v1545_v25   ;;  %1359 = vmatmul.msk.bf16.gmra.mxu3 %vm63_vm1, %v1683_v55 }
  0x74   :  { %v1698_v57 = vpop.permute.xlu2 %562 }
  0x75   :  { %v518_v58 = vpop.permute.xlu1 %517  ;;  %v508_v59 = vpop.permute.xlu0 %507 }
  0x76   :  { %754 = vperm.xlu2 %1409, %v1550_v26   ;;  %750 = vperm.xlu1 %1408, %v1555_v27  }
  0x77   :  { %770 = vperm.xlu0 %1407, %v1575_v29  }
  0x7a   :  { %1352 = vmatmul.msk.bf16.gmra.mxu2 %vm63_vm1, %v1705_v60 }
  0x7c   :  { %1336 = vmatmul.msk.bf16.gmra.mxu0 %vm63_vm1, %v1705_v60  ;;  %1344 = vmatmul.msk.bf16.gmra.mxu1 %vm63_vm1, %v1705_v60  ;;  %v1711_v61 = vpop.permute.xlu2 %577 }
  0x7d   :  { %v523_v62 = vpop.permute.xlu1 %522  ;;  %v513_v63 = vpop.permute.xlu0 %512 }
  0x7e   :  { %766 = vperm.xlu2 %1409, %v1580_v30   ;;  %762 = vperm.xlu1 %1408, %v1585_v31  }
  0x7f   :  { %1411 = vset.pattern.permute.xlu0 %v1441_v0  ;;  %1360 = vmatmul.msk.bf16.gmra.mxu3 %vm63_vm1, %v1705_v60 }
  0x80   :  { %814 = vperm.xlu0 %1411, %v1493_v13  }
  0x85   :  { %v1720_v4 = vpop.permute.xlu1 %542  ;;  %v1722_v5 = vpop.permute.xlu0 %537 }
  0x86   :  { %1410 = vset.pattern.permute.xlu2 %v1441_v0  ;;  %774 = vperm.xlu1 %1408, %v1593_v32  }
  0x87   :  { %v623_v6 = vpop.permute.xlu2 %622  ;;  %810 = vperm.xlu2 %1410, %v1479_v3  }
  0x88   :  { %834 = vperm.xlu0 %1411, %v1537_v24  }
  0x89   :  { %v122_v7 = vpop.f32.mrf.mxu0  ;;  %v171_v8 = vpop.f32.mrf.mxu1 }
  0x8a   :  { %v585_v9 = vmul.f32 %v508_v59, %v122_v7  ;;  %1377 = vmatmul.msk.bf16.vlgmr.msrb.gmra.mxu2 %vm63_vm1, %v1511_v21 }
  0x8c   :  { %1361 = vmatmul.msk.bf16.vlgmr.msrb.gmra.mxu0 %vm63_vm1, %v1511_v21  ;;  %1369 = vmatmul.msk.bf16.vlgmr.msrb.gmra.mxu1 %vm63_vm1, %v1511_v21 }
  0x8d   :  { %v1733_v10 = vpop.permute.xlu1 %557  ;;  %v1735_v11 = vpop.permute.xlu0 %552 }
  0x8e   :  { %1412 = vset.pattern.permute.xlu1 %v1441_v0  ;;  %v1740_v14 = vpop.f32.mrf.mxu2 }
  0x8f   :  { %v635_v12 = vpop.permute.xlu2 %634  ;;  %822 = vperm.xlu2 %1410, %v1507_v20   ;;  %818 = vperm.xlu1 %1412, %v1474_v2  }
  0x90   :  { %846 = vperm.xlu0 %1411, %v1555_v27   ;;  %v1742_v15 = vpop.f32.mrf.mxu3  ;;  %1385 = vmatmul.msk.bf16.vlgmr.msrb.gmra.mxu3 %vm63_vm1, %v1511_v21 }
  0x91   :  { %v124_v16 = vpop.f32.mrf.mxu0  ;;  %v173_v17 = vpop.f32.mrf.mxu1 }
  0x92   :  { %v586_v19 = vmul.f32 %v513_v63, %v124_v16  ;;  %v682_v34 = vmul.f32 %v623_v6, %v173_v17 }
  0x94   :  { %v1746_v36 = vadd.f32 %v682_v34, %v586_v19 }
  0x95   :  { %v1748_v37 = vpop.permute.xlu0 %567  ;;  %v1750_v38 = vpop.permute.xlu1 %572 }
  0x96   :  { %v1757_v40 = vpop.f32.mrf.mxu2 }
  0x97   :  { %v1752_v39 = vpop.permute.xlu2 %642  ;;  %830 = vperm.xlu2 %1410, %v1501_v18   ;;  %826 = vperm.xlu1 %1412, %v1469_v1  }
  0x98   :  { %858 = vperm.xlu0 %1411, %v1585_v31   ;;  %v1759_v41 = vpop.f32.mrf.mxu3 }
  0x99   :  { %v127_v21 = vpop.f32.mrf.mxu0  ;;  %v176_v42 = vpop.f32.mrf.mxu1 }
  0x9a   :  { %v587_v43 = vmul.f32 %v518_v58, %v127_v21  ;;  %1378 = vmatmul.msk.bf16.gmra.mxu2 %vm63_vm1, %v1559_v28 }
  0x9c   :  { %1362 = vmatmul.msk.bf16.gmra.mxu0 %vm63_vm1, %v1559_v28  ;;  %1370 = vmatmul.msk.bf16.gmra.mxu1 %vm63_vm1, %v1559_v28 }
  0x9d   :  { %v1767_v44 = vpop.permute.xlu0 %582 }
  0x9e   :  { %2380 = vst [vmem:[#allocation3_spill] sm:$0xff] %v1767_v44  ;;  %v225_v47 = vpop.f32.mrf.mxu2 }
  0x9f   :  { %v1769_v45 = vpop.permute.xlu2 %654  ;;  %842 = vperm.xlu2 %1410, %v1527_v22   ;;  %838 = vperm.xlu1 %1412, %v1532_v23   ;;  %v619_v46 = vpop.permute.xlu1 %618 }
  0xa0   :  { %870 = vperm.xlu0 %1411, %v1593_v32   ;;  %v681_v48 = vmul.f32 %v619_v46, %v171_v8  ;;  %1386 = vmatmul.msk.bf16.gmra.mxu3 %vm63_vm1, %v1559_v28  ;;  %v1776_v59 = vpop.f32.mrf.mxu3  ;;  %v1442_v8 = vmov 4  }
  0xa1   :  { %v129_v49 = vpop.f32.mrf.mxu0  ;;  %v178_v51 = vpop.f32.mrf.mxu1 }
  0xa2   :  { %v588_v58 = vmul.f32 %v523_v62, %v129_v49  ;;  %v1778_v63 = vadd.f32 %v681_v48, %v585_v9 }
  0xa6   :  { %v627_v0 = vpop.permute.xlu0 %626  ;;  %v1784_v17 = vpop.f32.mrf.mxu2 }
  0xa7   :  { %v1780_v6 = vpop.permute.xlu2 %666  ;;  %854 = vperm.xlu2 %1410, %v1545_v25   ;;  %v683_v7 = vmul.f32 %v627_v0, %v176_v42  ;;  %850 = vperm.xlu1 %1412, %v1550_v26   ;;  %v631_v16 = vpop.permute.xlu1 %630 }
  0xa8   :  { %1415 = vset.pattern.permute.xlu0 %v1442_v8  ;;  %v684_v19 = vmul.f32 %v631_v16, %v178_v51  ;;  %v1788_v46 = vpop.f32.mrf.mxu3 }
  0xa9   :  { %v699_v28 = vadd.f32 %v683_v7, %v587_v43  ;;  %914 = vperm.xlu0 %1415, %v1474_v2   ;;  %v132_v62 = vpop.f32.mrf.mxu0  ;;  %v181_v9 = vpop.f32.mrf.mxu1 }
  0xaa   :  { %v589_v34 = vmul.f32 %v1667_v53, %v132_v62  ;;  %v685_v21 = vmul.f32 %v635_v12, %v181_v9  ;;  %v1790_v48 = vadd.f32 %v684_v19, %v588_v58  ;;  %1379 = vmatmul.msk.bf16.gmra.mxu2 %vm63_vm1, %v1597_v33 }
  0xac   :  { %v701_v42 = vadd.f32 %v685_v21, %v589_v34  ;;  %1363 = vmatmul.msk.bf16.gmra.mxu0 %vm63_vm1, %v1597_v33  ;;  %1371 = vmatmul.msk.bf16.gmra.mxu1 %vm63_vm1, %v1597_v33 }
  0xae   :  { %v230_v12 = vpop.f32.mrf.mxu2 }
  0xaf   :  { %v1798_v43 = vpop.permute.xlu2 %678  ;;  %866 = vperm.xlu2 %1410, %v1575_v29   ;;  %862 = vperm.xlu1 %1412, %v1580_v30   ;;  %v639_v53 = vpop.permute.xlu1 %638 }
  0xb0   :  { %2381 = vst [vmem:[#allocation4_spill] sm:$0xff] %v1798_v43  ;;  %v647_v49 = vpop.permute.xlu0 %646  ;;  %1387 = vmatmul.msk.bf16.gmra.mxu3 %vm63_vm1, %v1597_v33 }
  0xb1   :  { %934 = vperm.xlu0 %1415, %v1532_v23   ;;  %v134_v51 = vpop.f32.mrf.mxu0  ;;  %v183_v0 = vpop.f32.mrf.mxu1 }
  0xb2   :  { %v590_v58 = vmul.f32 %v1676_v54, %v134_v51  ;;  %v1806_v7 = vpop.f32.mrf.mxu3  ;;  %v686_v16 = vmul.f32 %v639_v53, %v183_v0 }
  0xb3   :  { %2382 = vst [vmem:[#allocation5_spill] sm:$0xff] %v1806_v7 }
  0xb4   :  { %v1808_v19 = vadd.f32 %v686_v16, %v590_v58 }
  0xb6   :  { %v1810_v9 = vpop.f32.mrf.mxu2 }
  0xb7   :  { %1414 = vset.pattern.permute.xlu2 %v1442_v8  ;;  %1413 = vset.pattern.permute.xlu1 %v1442_v8  ;;  %v651_v62 = vpop.permute.xlu1 %650 }
  0xb8   :  { %910 = vperm.xlu2 %1414, %v1493_v13   ;;  %v723_v34 = vpop.permute.xlu2 %722  ;;  %906 = vperm.xlu1 %1413, %v1479_v3   ;;  %v1815_v33 = vpop.permute.xlu0 %658 }
  0xb9   :  { %946 = vperm.xlu0 %1415, %v1550_v26   ;;  %v779_v54 = vmul.f32 %v723_v34, %v225_v47  ;;  %v137_v21 = vpop.f32.mrf.mxu0  ;;  %v186_v51 = vpop.f32.mrf.mxu1 }
  0xba   :  { %v591_v53 = vmul.f32 %v1722_v5, %v137_v21  ;;  %v687_v58 = vmul.f32 %v1752_v39, %v186_v51  ;;  %v1819_v8 = vpop.f32.mrf.mxu3  ;;  %1380 = vmatmul.msk.bf16.gmra.mxu2 %vm63_vm1, %v1615_v35 }
  0xbb   :  { %v1821_v0 = vadd.f32 %v779_v54, %v699_v28 }
  0xbc   :  { %1364 = vmatmul.msk.bf16.gmra.mxu0 %vm63_vm1, %v1615_v35  ;;  %1372 = vmatmul.msk.bf16.gmra.mxu1 %vm63_vm1, %v1615_v35  ;;  %v1827_v16 = vadd.f32 %v687_v58, %v591_v53 }
  0xbd   :  { %2383 = vst [vmem:[#allocation6_spill] sm:$0xff] %v1821_v0 }
  0xbe   :  { %v1833_v5 = vpop.f32.mrf.mxu2 }
  0xbf   :  { %v1831_v47 = vpop.permute.xlu1 %662 }
  0xc0   :  { %922 = vperm.xlu2 %1414, %v1469_v1   ;;  %v731_v39 = vpop.permute.xlu2 %730  ;;  %918 = vperm.xlu1 %1413, %v1507_v20   ;;  %v1838_v28 = vpop.permute.xlu0 %670 }
  0xc1   :  { %958 = vperm.xlu0 %1415, %v1580_v30   ;;  %v781_v34 = vmul.f32 %v731_v39, %v230_v12  ;;  %v139_v54 = vpop.f32.mrf.mxu0  ;;  %v188_v21 = vpop.f32.mrf.mxu1  ;;  %1388 = vmatmul.msk.bf16.gmra.mxu3 %vm63_vm1, %v1615_v35  ;;  %v1443_v12 = vmov 5  }
  0xc2   :  { %v592_v51 = vmul.f32 %v1720_v4, %v139_v54  ;;  %v688_v53 = vmul.f32 %v647_v49, %v188_v21  ;;  %v1843_v58 = vpop.f32.mrf.mxu3 }
  0xc3   :  { %v1845_v7 = vadd.f32 %v781_v34, %v701_v42 }
  0xc4   :  { %v704_v0 = vadd.f32 %v688_v53, %v592_v51 }
  0xc6   :  { %v237_v44 = vpop.f32.mrf.mxu2 }
  0xc7   :  { %v1847_v43 = vpop.permute.xlu1 %674 }
  0xc8   :  { %930 = vperm.xlu2 %1414, %v1537_v24   ;;  %v743_v30 = vpop.permute.xlu2 %742  ;;  %926 = vperm.xlu1 %1413, %v1501_v18  }
  0xc9   :  { %1416 = vset.pattern.permute.xlu0 %v1443_v12  ;;  %v715_v35 = vpop.permute.xlu0 %714  ;;  %v784_v39 = vmul.f32 %v743_v30, %v237_v44  ;;  %v142_v42 = vpop.f32.mrf.mxu0 }
  0xca   :  { %v777_v4 = vmul.f32 %v715_v35, %v1740_v14  ;;  %1002 = vperm.xlu0 %1416, %v1479_v3   ;;  %v191_v49 = vpop.f32.mrf.mxu1  ;;  %v593_v34 = vmul.f32 %v1689_v56, %v142_v42  ;;  %v1855_v21 = vpop.f32.mrf.mxu3  ;;  %1381 = vmatmul.msk.bf16.gmra.mxu2 %vm63_vm1, %v1643_v50 }
  0xcb   :  { %v689_v54 = vmul.f32 %v651_v62, %v191_v49  ;;  %v1857_v51 = vadd.f32 %v784_v39, %v704_v0 }
  0xcc   :  { %v793_v53 = vadd.f32 %v777_v4, %v1778_v63  ;;  %1365 = vmatmul.msk.bf16.gmra.mxu0 %vm63_vm1, %v1643_v50  ;;  %1373 = vmatmul.msk.bf16.gmra.mxu1 %vm63_vm1, %v1643_v50 }
  0xcd   :  { %v705_v30 = vadd.f32 %v689_v54, %v593_v34 }
  0xce   :  { %v240_v14 = vpop.f32.mrf.mxu2 }
  0xd0   :  { %942 = vperm.xlu2 %1414, %v1555_v27   ;;  %v755_v56 = vpop.permute.xlu2 %754  ;;  %938 = vperm.xlu1 %1413, %v1527_v22   ;;  %v719_v44 = vpop.permute.xlu1 %718 }
  0xd1   :  { %v778_v62 = vmul.f32 %v719_v44, %v1757_v40  ;;  %v735_v63 = vpop.permute.xlu0 %734  ;;  %v144_v0 = vpop.f32.mrf.mxu0  ;;  %1389 = vmatmul.msk.bf16.gmra.mxu3 %vm63_vm1, %v1643_v50 }
  0xd2   :  { %1022 = vperm.xlu0 %1416, %v1501_v18   ;;  %v782_v35 = vmul.f32 %v735_v63, %v1810_v9  ;;  %v594_v39 = vmul.f32 %v1735_v11, %v144_v0  ;;  %v193_v4 = vpop.f32.mrf.mxu1  ;;  %v1874_v42 = vpop.f32.mrf.mxu3 }
  0xd3   :  { %v1877_v49 = vadd.f32 %v778_v62, %v1746_v36  ;;  %v690_v34 = vmul.f32 %v1769_v45, %v193_v4 }
  0xd4   :  { %v1881_v40 = vadd.f32 %v782_v35, %v1808_v19 }
  0xd5   :  { %v706_v54 = vadd.f32 %v690_v34, %v594_v39 }
  0xd6   :  { %v242_v44 = vpop.f32.mrf.mxu2 }
  0xd8   :  { %954 = vperm.xlu2 %1414, %v1585_v31   ;;  %v1884_v50 = vpop.permute.xlu2 %766  ;;  %950 = vperm.xlu1 %1413, %v1545_v25   ;;  %v727_v11 = vpop.permute.xlu1 %726 }
  0xd9   :  { %v780_v9 = vmul.f32 %v727_v11, %v1784_v17  ;;  %v747_v63 = vpop.permute.xlu0 %746  ;;  %v147_v36 = vpop.f32.mrf.mxu0 }
  0xda   :  { %1034 = vperm.xlu0 %1416, %v1527_v22   ;;  %v785_v62 = vmul.f32 %v747_v63, %v240_v14  ;;  %v595_v45 = vmul.f32 %v1733_v10, %v147_v36  ;;  %v196_v19 = vpop.f32.mrf.mxu1  ;;  %v1890_v0 = vpop.f32.mrf.mxu3  ;;  %1382 = vmatmul.msk.bf16.gmra.mxu2 %vm63_vm1, %v1661_v52 }
  0xdb   :  { %v796_v35 = vadd.f32 %v780_v9, %v1790_v48  ;;  %v691_v39 = vmul.f32 %v1815_v33, %v196_v19 }
  0xdc   :  { %1366 = vmatmul.msk.bf16.gmra.mxu0 %vm63_vm1, %v1661_v52  ;;  %1374 = vmatmul.msk.bf16.gmra.mxu1 %vm63_vm1, %v1661_v52  ;;  %v1898_v17 = vadd.f32 %v785_v62, %v705_v30 }
  0xdd   :  { %v707_v14 = vadd.f32 %v691_v39, %v595_v45 }
  0xde   :  { %v245_v10 = vpop.f32.mrf.mxu2 }
  0xdf   :  { %v787_v4 = vmul.f32 %v755_v56, %v245_v10 }
  0xe0   :  { %966 = vperm.xlu2 %1414, %v1593_v32   ;;  %962 = vperm.xlu1 %1413, %v1575_v29   ;;  %v739_v48 = vpop.permute.xlu1 %738 }
  0xe1   :  { %v811_v33 = vpop.permute.xlu2 %810  ;;  %v783_v34 = vmul.f32 %v739_v48, %v1833_v5  ;;  %v759_v30 = vpop.permute.xlu0 %758  ;;  %1390 = vmatmul.msk.bf16.gmra.mxu3 %vm63_vm1, %v1661_v52  ;;  %v1909_v63 = vadd.f32 %v787_v4, %v707_v14 }
  0xe2   :  { %v873_v11 = vmul.f32 %v811_v33, %v1742_v15  ;;  %1046 = vperm.xlu0 %1416, %v1545_v25   ;;  %v149_v9 = vpop.f32.mrf.mxu0  ;;  %v198_v56 = vpop.f32.mrf.mxu1 }
  0xe3   :  { %v596_v36 = vmul.f32 %v1698_v57, %v149_v9  ;;  %v1912_v62 = vpop.f32.mrf.mxu3  ;;  %v1915_v45 = vadd.f32 %v783_v34, %v1827_v16  ;;  %v692_v15 = vmul.f32 %v1831_v47, %v198_v56 }
  0xe4   :  { %v1917_v5 = vadd.f32 %v873_v11, %v793_v53 }
  0xe5   :  { %v708_v19 = vadd.f32 %v692_v15, %v596_v36 }
  0xe6   :  { %v247_v39 = vpop.f32.mrf.mxu2 }
  0xe7   :  { %v788_v10 = vmul.f32 %v759_v30, %v247_v39 }
  0xe8   :  { %1418 = vset.pattern.permute.xlu2 %v1443_v12  ;;  %1417 = vset.pattern.permute.xlu1 %v1443_v12  ;;  %v751_v52 = vpop.permute.xlu1 %750 }
  0xe9   :  { %1010 = vperm.xlu2 %1418, %v1474_v2   ;;  %v823_v57 = vpop.permute.xlu2 %822  ;;  %v786_v14 = vmul.f32 %v751_v52, %v242_v44  ;;  %1006 = vperm.xlu1 %1417, %v1493_v13   ;;  %v771_v16 = vpop.permute.xlu0 %770  ;;  %v1926_v53 = vadd.f32 %v788_v10, %v708_v19 }
  0xea   :  { %v876_v4 = vmul.f32 %v823_v57, %v1788_v46  ;;  %1058 = vperm.xlu0 %1416, %v1575_v29   ;;  %v152_v47 = vpop.f32.mrf.mxu0  ;;  %v201_v33 = vpop.f32.mrf.mxu1  ;;  %1383 = vmatmul.msk.bf16.gmra.mxu2 %vm63_vm1, %v1683_v55 }
  0xeb   :  { %v597_v48 = vmul.f32 %v1748_v37, %v152_v47  ;;  %v296_v34 = vpop.f32.mrf.mxu3  ;;  %v1929_v12 = vadd.f32 %v786_v14, %v706_v54  ;;  %v693_v44 = vmul.f32 %v1780_v6, %v201_v33  ;;  %v1444_v6 = vmov 6  }
  0xec   :  { %v1931_v11 = vadd.f32 %v876_v4, %v796_v35  ;;  %1367 = vmatmul.msk.bf16.gmra.mxu0 %vm63_vm1, %v1683_v55  ;;  %1375 = vmatmul.msk.bf16.gmra.mxu1 %vm63_vm1, %v1683_v55 }
  0xed   :  { %v709_v46 = vadd.f32 %v693_v44, %v597_v48 }
  0xee   :  { %v250_v30 = vpop.f32.mrf.mxu2 }
  0xf0   :  { %v763_v37 = vpop.permute.xlu1 %762 }
  0xf1   :  { %1018 = vperm.xlu2 %1418, %v1469_v1   ;;  %v831_v54 = vpop.permute.xlu2 %830  ;;  %v789_v9 = vmul.f32 %v763_v37, %v250_v30  ;;  %1014 = vperm.xlu1 %1417, %v1507_v20  }
  0xf2   :  { %v878_v35 = vmul.f32 %v831_v54, %v1819_v8  ;;  %1420 = vset.pattern.permute.xlu0 %v1444_v6  ;;  %v815_v36 = vpop.permute.xlu0 %814  ;;  %v154_v56 = vpop.f32.mrf.mxu0  ;;  %1391 = vmatmul.msk.bf16.gmra.mxu3 %vm63_vm1, %v1683_v55 }
  0xf3   :  { %v874_v15 = vmul.f32 %v815_v36, %v1759_v41  ;;  %v598_v19 = vmul.f32 %v1750_v38, %v154_v56  ;;  %v203_v39 = vpop.f32.mrf.mxu1  ;;  %1102 = vperm.xlu0 %1420, %v1493_v13   ;;  %v299_v10 = vpop.f32.mrf.mxu3  ;;  %v1949_v1 = vadd.f32 %v789_v9, %v709_v46 }
  0xf4   :  { %v1952_v8 = vadd.f32 %v878_v35, %v1881_v40  ;;  %v694_v52 = vmul.f32 %v1838_v28, %v203_v39  ;;  %v2386_v39 = vld [vmem:[#allocation6_spill] sm:$0xff] }
  0xf5   :  { %v1956_v57 = vadd.f32 %v874_v15, %v1877_v49  ;;  %v2385_v15 = vld [vmem:[#allocation4_spill] sm:$0xff] }
  0xf6   :  { %v710_v41 = vadd.f32 %v694_v52, %v598_v19  ;;  %v252_v14 = vpop.f32.mrf.mxu2 }
  0xf7   :  { %v790_v38 = vmul.f32 %v1884_v50, %v252_v14 }
  0xf8   :  { %v775_v4 = vpop.permute.xlu1 %774 }
  0xf9   :  { %1030 = vperm.xlu2 %1418, %v1532_v23   ;;  %v843_v13 = vpop.permute.xlu2 %842  ;;  %1026 = vperm.xlu1 %1417, %v1537_v24   ;;  %v1962_v48 = vadd.f32 %v790_v38, %v710_v41 }
  0xfa   :  { %v881_v55 = vmul.f32 %v843_v13, %v1874_v42  ;;  %v835_v47 = vpop.permute.xlu0 %834  ;;  %v157_v40 = vpop.f32.mrf.mxu0  ;;  %1384 = vmatmul.msk.bf16.gmra.mxu2 %vm63_vm1, %v1705_v60 }
  0xfb   :  { %v879_v28 = vmul.f32 %v835_v47, %v1843_v58  ;;  %v599_v49 = vmul.f32 %v1711_v61, %v157_v40  ;;  %v206_v33 = vpop.f32.mrf.mxu1  ;;  %1122 = vperm.xlu0 %1420, %v1537_v24   ;;  %v1975_v42 = vpop.f32.mrf.mxu3  ;;  %v2388_v40 = vld [vmem:[#allocation5_spill] sm:$0xff] }
  0xfc   :  { %v1968_v50 = vadd.f32 %v881_v55, %v1898_v17  ;;  %v695_v44 = vmul.f32 %v1847_v43, %v206_v33  ;;  %1368 = vmatmul.msk.bf16.gmra.mxu0 %vm63_vm1, %v1705_v60  ;;  %1376 = vmatmul.msk.bf16.gmra.mxu1 %vm63_vm1, %v1705_v60 }
  0xfd   :  { %v1978_v58 = vadd.f32 %v879_v28, %v1915_v45 }
  0xfe   :  { %v711_v24 = vadd.f32 %v695_v44, %v599_v49  ;;  %v255_v61 = vpop.f32.mrf.mxu2 }
  0xff   :  { %v791_v17 = vmul.f32 %v771_v16, %v255_v61 }
 0x101   :  { %1042 = vperm.xlu2 %1418, %v1550_v26   ;;  %v855_v43 = vpop.permute.xlu2 %854  ;;  %1038 = vperm.xlu1 %1417, %v1555_v27   ;;  %v819_v30 = vpop.permute.xlu1 %818  ;;  %v807_v54 = vadd.f32 %v791_v17, %v711_v24 }
 0x102   :  { %v884_v46 = vmul.f32 %v855_v43, %v296_v34  ;;  %v847_v37 = vpop.permute.xlu0 %846  ;;  %v875_v9 = vmul.f32 %v819_v30, %v1776_v59  ;;  %v159_v35 = vpop.f32.mrf.mxu0  ;;  %1392 = vmatmul.msk.bf16.gmra.mxu3 %vm63_vm1, %v1705_v60  ;;  %v2384_v34 = vld [vmem:[#allocation3_spill] sm:$0xff] }
 0x103   :  { %v882_v45 = vmul.f32 %v847_v37, %v1890_v0  ;;  %v208_v36 = vpop.f32.mrf.mxu1  ;;  %1134 = vperm.xlu0 %1420, %v1555_v27   ;;  %v600_v56 = vmul.f32 %v2384_v34, %v159_v35  ;;  %v304_v41 = vpop.f32.mrf.mxu3  ;;  %v2387_v27 = vld [vmem:[#allocation2_spill] sm:$0xff] }
 0x104   :  { %v1990_v16 = vadd.f32 %v884_v46, %v1926_v53  ;;  %v696_v19 = vmul.f32 %v2385_v15, %v208_v36  ;;  %v891_v52 = vadd.f32 %v875_v9, %v2386_v39 }
 0x105   :  { %v1996_v59 = vadd.f32 %v882_v45, %v1929_v12 }
 0x106   :  { %v712_v0 = vadd.f32 %v696_v19, %v600_v56  ;;  %v257_v14 = vpop.f32.mrf.mxu2 }
 0x107   :  { %v792_v38 = vmul.f32 %v775_v4, %v257_v14 }
 0x109   :  { %1054 = vperm.xlu2 %1418, %v2387_v27   ;;  %v867_v13 = vpop.permute.xlu2 %866  ;;  %1050 = vperm.xlu1 %1417, %v1585_v31   ;;  %v827_v60 = vpop.permute.xlu1 %826  ;;  %v808_v47 = vadd.f32 %v792_v38, %v712_v0 }
 0x10a   :  { %v859_v53 = vpop.permute.xlu0 %858  ;;  %v887_v55 = vmul.f32 %v867_v13, %v304_v41  ;;  %v877_v28 = vmul.f32 %v827_v60, %v2388_v40  ;;  %v318_v33 = vpop.f32.mrf.mxu0 }
 0x10b   :  { %v885_v49 = vmul.f32 %v859_v53, %v299_v10  ;;  %v2001_v44 = vpop.f32.mrf.mxu1  ;;  %1146 = vperm.xlu0 %1420, %v1585_v31   ;;  %v306_v17 = vpop.f32.mrf.mxu3 }
 0x10c   :  { %v2004_v12 = vadd.f32 %v887_v55, %v807_v54  ;;  %v893_v4 = vadd.f32 %v877_v28, %v1845_v7 }
 0x10d   :  { %v2008_v24 = vadd.f32 %v885_v49, %v1949_v1 }
 0x10e   :  { %v2010_v61 = vpop.f32.mrf.mxu2 }
 0x111   :  { %1419 = vset.pattern.permute.xlu2 %v1444_v6  ;;  %1062 = vperm.xlu1 %1417, %v1593_v32   ;;  %v839_v10 = vpop.permute.xlu1 %838 }
 0x112   :  { %v871_v43 = vpop.permute.xlu0 %870  ;;  %1098 = vperm.xlu2 %1419, %v1479_v3   ;;  %v880_v31 = vmul.f32 %v839_v10, %v1855_v21  ;;  %v320_v30 = vpop.f32.mrf.mxu0 }
 0x113   :  { %v888_v46 = vmul.f32 %v871_v43, %v306_v17  ;;  %v2016_v37 = vpop.f32.mrf.mxu1  ;;  %1158 = vperm.xlu0 %1420, %v1593_v32   ;;  %v911_v7 = vpop.permute.xlu2 %910 }
 0x114   :  { %v2020_v1 = vadd.f32 %v880_v31, %v1857_v51  ;;  %v970_v9 = vmul.f32 %v911_v7, %v320_v30  ;;  %v1445_v51 = vmov 7  }
 0x115   :  { %v2022_v54 = vadd.f32 %v888_v46, %v808_v47 }
 0x116   :  { %v2025_v45 = vadd.f32 %v970_v9, %v1956_v57  ;;  %v2027_v35 = vpop.f32.mrf.mxu2 }
 0x119   :  { %1421 = vset.pattern.permute.xlu1 %v1444_v6  ;;  %v851_v3 = vpop.permute.xlu1 %850 }
 0x11a   :  { %1110 = vperm.xlu2 %1419, %v1507_v20   ;;  %v883_v21 = vmul.f32 %v851_v3, %v1912_v62  ;;  %v323_v32 = vpop.f32.mrf.mxu0  ;;  %1106 = vperm.xlu1 %1421, %v1474_v2  }
 0x11b   :  { %v2032_v36 = vpop.f32.mrf.mxu1  ;;  %1424 = vset.pattern.permute.xlu0 %v1445_v51  ;;  %v923_v34 = vpop.permute.xlu2 %922 }
 0x11c   :  { %v915_v57 = vpop.permute.xlu0 %914  ;;  %1202 = vperm.xlu0 %1424, %v1474_v2   ;;  %v2038_v56 = vadd.f32 %v883_v21, %v1909_v63  ;;  %v2051_v2 = vld [vmem:[%s2373_s0 + $0x20] sm:$0xff] }
 0x11d   :  { %v971_v6 = vmul.f32 %v915_v57, %v323_v32 }
 0x11e   :  { %v2042_v20 = vpop.f32.mrf.mxu2 }
 0x11f   :  { %v2040_v15 = vadd.f32 %v971_v6, %v891_v52  ;;  %v1427_v6 = vld [vmem:[%s2373_s0 + $0x8] sm:$0xff] }
 0x121   :  { %v863_v62 = vpop.permute.xlu1 %862 }
 0x122   :  { %1118 = vperm.xlu2 %1419, %v1501_v18   ;;  %v886_v19 = vmul.f32 %v863_v62, %v1975_v42  ;;  %v325_v39 = vpop.f32.mrf.mxu0  ;;  %1114 = vperm.xlu1 %1421, %v2051_v2   ;;  %v2060_v42 = vpop.f32.mrf.mxu3 }
 0x123   :  { %v2046_v0 = vpop.f32.mrf.mxu1  ;;  %v931_v63 = vpop.permute.xlu2 %930 }
 0x124   :  { %1222 = vperm.xlu0 %1424, %v1532_v23   ;;  %v935_v52 = vpop.permute.xlu0 %934  ;;  %v2056_v41 = vadd.f32 %v886_v19, %v1962_v48 }
 0x126   :  { %v2058_v18 = vpop.f32.mrf.mxu2 }
 0x12a   :  { %1130 = vperm.xlu2 %1419, %v1527_v22   ;;  %v328_v14 = vpop.f32.mrf.mxu0  ;;  %1126 = vperm.xlu1 %1421, %v1532_v23   ;;  %v907_v53 = vpop.permute.xlu1 %906 }
 0x12b   :  { %v2063_v38 = vpop.f32.mrf.mxu1  ;;  %v973_v13 = vmul.f32 %v923_v34, %v328_v14  ;;  %v2066_v60 = vpop.permute.xlu2 %942  ;;  %v969_v55 = vmul.f32 %v907_v53, %v318_v33 }
 0x12c   :  { %1234 = vperm.xlu0 %1424, %v1550_v26   ;;  %v2069_v48 = vpop.permute.xlu0 %946  ;;  %v2074_v22 = vpop.f32.mrf.mxu3 }
 0x12d   :  { %v989_v47 = vadd.f32 %v973_v13, %v893_v4  ;;  %v985_v40 = vadd.f32 %v969_v55, %v1917_v5 }
 0x12e   :  { %v2072_v28 = vpop.f32.mrf.mxu2 }
 0x132   :  { %1142 = vperm.xlu2 %1419, %v1545_v25   ;;  %v330_v49 = vpop.f32.mrf.mxu0  ;;  %1138 = vperm.xlu1 %1421, %v1550_v26   ;;  %v919_v10 = vpop.permute.xlu1 %918 }
 0x133   :  { %v379_v23 = vpop.f32.mrf.mxu1  ;;  %v2078_v17 = vpop.permute.xlu2 %954  ;;  %v972_v33 = vmul.f32 %v919_v10, %v325_v39 }
 0x134   :  { %1246 = vperm.xlu0 %1424, %v2387_v27   ;;  %v2081_v43 = vpop.permute.xlu0 %958  ;;  %v2089_v25 = vpop.f32.mrf.mxu3 }
 0x135   :  { %v2084_v5 = vadd.f32 %v972_v33, %v1931_v11 }
 0x136   :  { %v2086_v4 = vpop.f32.mrf.mxu2 }
 0x13a   :  { %1154 = vperm.xlu2 %1419, %v1575_v29   ;;  %v333_v31 = vpop.f32.mrf.mxu0  ;;  %1150 = vperm.xlu1 %1421, %v2387_v27   ;;  %v927_v7 = vpop.permute.xlu1 %926 }
 0x13b   :  { %v2091_v46 = vpop.f32.mrf.mxu1  ;;  %v975_v26 = vmul.f32 %v931_v63, %v333_v31  ;;  %v2094_v30 = vpop.permute.xlu2 %966  ;;  %v974_v9 = vmul.f32 %v927_v7, %v330_v49 }
 0x13c   :  { %v1003_v3 = vpop.permute.xlu0 %1002 }
 0x13d   :  { %v2097_v11 = vadd.f32 %v975_v26, %v1978_v58  ;;  %v1065_v21 = vmul.f32 %v1003_v3, %v2001_v44  ;;  %v990_v29 = vadd.f32 %v974_v9, %v1952_v8  ;;  %v1428_v8 = vld [vmem:[%s2373_s0] sm:$0xff] }
 0x13e   :  { %v2103_v34 = vpop.f32.mrf.mxu2 }
 0x13f   :  { %v2101_v32 = vadd.f32 %v1065_v21, %v985_v40  ;;  %v1430_v21 = vld [vmem:[%s2373_s0 + $0x30] sm:$0xff] }
 0x142   :  { %1423 = vset.pattern.permute.xlu2 %v1445_v51  ;;  %v335_v27 = vpop.f32.mrf.mxu0  ;;  %1422 = vset.pattern.permute.xlu1 %v1445_v51  ;;  %v939_v62 = vpop.permute.xlu1 %938 }
 0x143   :  { %v384_v57 = vpop.f32.mrf.mxu1  ;;  %1198 = vperm.xlu2 %1423, %v1427_v6   ;;  %v976_v58 = vmul.f32 %v935_v52, %v335_v27  ;;  %v1011_v44 = vpop.permute.xlu2 %1010  ;;  %1194 = vperm.xlu1 %1422, %v1428_v8  }
 0x144   :  { %v1067_v19 = vmul.f32 %v1011_v44, %v2032_v36  ;;  %v1023_v39 = vpop.permute.xlu0 %1022  ;;  %v2115_v51 = vpop.f32.mrf.mxu3 }
 0x145   :  { %v992_v63 = vadd.f32 %v976_v58, %v2020_v1  ;;  %v1070_v14 = vmul.f32 %v1023_v39, %v379_v23  ;;  %v1429_v1 = vld [vmem:[%s2373_s0 + $0x18] sm:$0xff]  ;;  %v1432_v39 = vld [vmem:[%s2373_s0 + $0x48] sm:$0xff] }
 0x146   :  { %v2118_v13 = vadd.f32 %v1067_v19, %v2040_v15  ;;  %v2122_v52 = vpop.f32.mrf.mxu2 }
 0x147   :  { %v2120_v53 = vadd.f32 %v1070_v14, %v990_v29 }
 0x14a   :  { %v338_v55 = vpop.f32.mrf.mxu0  ;;  %v951_v10 = vpop.permute.xlu1 %950 }
 0x14b   :  { %v387_v40 = vpop.f32.mrf.mxu1  ;;  %1210 = vperm.xlu2 %1423, %v2051_v2   ;;  %v977_v49 = vmul.f32 %v939_v62, %v338_v55  ;;  %v1019_v36 = vpop.permute.xlu2 %1018  ;;  %1206 = vperm.xlu1 %1422, %v1429_v1   ;;  %v1433_v55 = vld [vmem:[%s2373_s0 + $0x40] sm:$0xff] }
 0x14c   :  { %v1069_v23 = vmul.f32 %v1019_v36, %v2063_v38  ;;  %v1035_v15 = vpop.permute.xlu0 %1034  ;;  %v2134_v9 = vpop.f32.mrf.mxu3 }
 0x14d   :  { %v993_v33 = vadd.f32 %v977_v49, %v1968_v50  ;;  %v1073_v31 = vmul.f32 %v1035_v15, %v387_v40 }
 0x14e   :  { %v2130_v26 = vadd.f32 %v1069_v23, %v989_v47  ;;  %v1431_v47 = vld [vmem:[%s2373_s0 + $0x28] sm:$0xff]  ;;  %v2147_v58 = vpop.f32.mrf.mxu2 }
 0x14f   :  { %v2132_v7 = vadd.f32 %v1073_v31, %v993_v33 }
 0x152   :  { %v340_v2 = vpop.f32.mrf.mxu0  ;;  %v2142_v29 = vpop.permute.xlu1 %962 }
 0x153   :  { %v2136_v3 = vpop.f32.mrf.mxu1  ;;  %1218 = vperm.xlu2 %1423, %v1430_v21   ;;  %v978_v38 = vmul.f32 %v2066_v60, %v340_v2  ;;  %v1031_v50 = vpop.permute.xlu2 %1030  ;;  %1214 = vperm.xlu1 %1422, %v1431_v47   ;;  %v1435_v21 = vld [vmem:[%s2373_s0 + $0x58] sm:$0xff] }
 0x154   :  { %v1072_v27 = vmul.f32 %v1031_v50, %v384_v57  ;;  %v1047_v6 = vpop.permute.xlu0 %1046  ;;  %v2154_v8 = vpop.f32.mrf.mxu3 }
 0x155   :  { %v2150_v62 = vadd.f32 %v978_v38, %v1996_v59 }
 0x156   :  { %v2152_v44 = vadd.f32 %v1072_v27, %v992_v63  ;;  %v2166_v36 = vpop.f32.mrf.mxu2 }
 0x15a   :  { %v343_v60 = vpop.f32.mrf.mxu0 }
 0x15b   :  { %v392_v19 = vpop.f32.mrf.mxu1  ;;  %1230 = vperm.xlu2 %1423, %v1432_v39   ;;  %v979_v14 = vmul.f32 %v2069_v48, %v343_v60  ;;  %v1043_v57 = vpop.permute.xlu2 %1042  ;;  %1226 = vperm.xlu1 %1422, %v1433_v55   ;;  %v1434_v48 = vld [vmem:[%s2373_s0 + $0x60] sm:$0xff] }
 0x15c   :  { %v2163_v59 = vpop.permute.xlu1 %1006  ;;  %v1075_v63 = vmul.f32 %v1043_v57, %v392_v19  ;;  %v1059_v40 = vpop.permute.xlu0 %1058  ;;  %v1437_v57 = vld [vmem:[%s2373_s0 + $0x70] sm:$0xff] }
 0x15d   :  { %v995_v49 = vadd.f32 %v979_v14, %v2038_v56  ;;  %v2179_v47 = vpop.f32.mrf.mxu3  ;;  %v1436_v14 = vld [vmem:[%s2373_s0 + $0x78] sm:$0xff] }
 0x15f   :  { %v2168_v1 = vadd.f32 %v1075_v63, %v995_v49 }
 0x162   :  { %v345_v23 = vpop.f32.mrf.mxu0 }
 0x163   :  { %v394_v15 = vpop.f32.mrf.mxu1  ;;  %1242 = vperm.xlu2 %1423, %v1434_v48   ;;  %v980_v33 = vmul.f32 %v951_v10, %v345_v23  ;;  %v1055_v2 = vpop.permute.xlu2 %1054  ;;  %1238 = vperm.xlu1 %1422, %v1435_v21  }
 0x164   :  { %v1076_v31 = vmul.f32 %v1047_v6, %v394_v15  ;;  %v1015_v56 = vpop.permute.xlu1 %1014  ;;  %v2183_v10 = vpop.f32.mrf.mxu2 }
 0x165   :  { %v1068_v38 = vmul.f32 %v1015_v56, %v2046_v0  ;;  %v2177_v50 = vpop.permute.xlu0 %1102  ;;  %v996_v27 = vadd.f32 %v980_v33, %v1990_v16  ;;  %v2205_v15 = vpop.f32.mrf.mxu3 }
 0x167   :  { %v1084_v60 = vadd.f32 %v1068_v38, %v2084_v5  ;;  %v1092_v19 = vadd.f32 %v1076_v31, %v996_v27 }
 0x16a   :  { %v348_v6 = vpop.f32.mrf.mxu0 }
 0x16b   :  { %v2185_v39 = vpop.f32.mrf.mxu1  ;;  %1254 = vperm.xlu2 %1423, %v1436_v14   ;;  %v981_v0 = vmul.f32 %v2078_v17, %v348_v6  ;;  %1250 = vperm.xlu1 %1422, %v1437_v57  }
 0x16c   :  { %v2194_v16 = vpop.permute.xlu1 %1026  ;;  %v1099_v5 = vpop.permute.xlu2 %1098 }
 0x16d   :  { %v1161_v55 = vmul.f32 %v1099_v5, %v2010_v61  ;;  %v2197_v63 = vpop.permute.xlu0 %1122  ;;  %v2200_v49 = vadd.f32 %v981_v0, %v2008_v24  ;;  %v443_v38 = vpop.f32.mrf.mxu2 }
 0x16e   :  { %v2218_v14 = vpop.f32.mrf.mxu3 }
 0x16f   :  { %v2203_v23 = vadd.f32 %v1161_v55, %v2101_v32 }
 0x172   :  { %v350_v17 = vpop.f32.mrf.mxu0 }
 0x173   :  { %v399_v48 = vpop.f32.mrf.mxu1  ;;  %v982_v33 = vmul.f32 %v2081_v43, %v350_v17 }
 0x174   :  { %v2208_v31 = vpop.permute.xlu1 %1038  ;;  %v1111_v21 = vpop.permute.xlu2 %1110  ;;  %v1078_v27 = vmul.f32 %v1055_v2, %v399_v48 }
 0x175   :  { %v1164_v56 = vmul.f32 %v1111_v21, %v2058_v18  ;;  %v2211_v61 = vpop.permute.xlu0 %1134  ;;  %v998_v24 = vadd.f32 %v982_v33, %v2056_v41  ;;  %v2230_v48 = vpop.f32.mrf.mxu2 }
 0x177   :  { %v2214_v6 = vadd.f32 %v1164_v56, %v1084_v60  ;;  %v2216_v32 = vadd.f32 %v1078_v27, %v998_v24  ;;  %v2232_v56 = vpop.f32.mrf.mxu3 }
 0x17a   :  { %v353_v0 = vpop.f32.mrf.mxu0 }
 0x17b   :  { %v402_v57 = vpop.f32.mrf.mxu1  ;;  %v983_v43 = vmul.f32 %v2142_v29, %v353_v0 }
 0x17c   :  { %v2221_v5 = vpop.permute.xlu1 %1050  ;;  %v1119_v55 = vpop.permute.xlu2 %1118  ;;  %v1079_v2 = vmul.f32 %v1059_v40, %v402_v57 }
 0x17d   :  { %v1166_v18 = vmul.f32 %v1119_v55, %v2086_v4  ;;  %v2224_v17 = vpop.permute.xlu0 %1146  ;;  %v999_v41 = vadd.f32 %v983_v43, %v2004_v12  ;;  %v2246_v40 = vpop.f32.mrf.mxu2 }
 0x17f   :  { %v2228_v60 = vadd.f32 %v1166_v18, %v2120_v53  ;;  %v1095_v33 = vadd.f32 %v1079_v2, %v999_v41  ;;  %v490_v18 = vpop.f32.mrf.mxu3 }
 0x182   :  { %v355_v21 = vpop.f32.mrf.mxu0 }
 0x183   :  { %v984_v29 = vmul.f32 %v2094_v30, %v355_v21 }
 0x184   :  { %v2235_v24 = vpop.permute.xlu1 %1062  ;;  %v1131_v27 = vpop.permute.xlu2 %1130 }
 0x185   :  { %v1169_v4 = vmul.f32 %v1131_v27, %v2147_v58  ;;  %v2238_v0 = vpop.permute.xlu0 %1158  ;;  %v2241_v12 = vadd.f32 %v984_v29, %v2022_v54  ;;  %v2256_v54 = vld [vmem:[%s2375_s2] ss:$0 sm:$0xff]  ;;  %v451_v29 = vpop.f32.mrf.mxu2 }
 0x187   :  { %v2244_v53 = vadd.f32 %v1169_v4, %v2132_v7 }
 0x18c   :  { %v1143_v57 = vpop.permute.xlu2 %1142  ;;  %v1107_v55 = vpop.permute.xlu1 %1106 }
 0x18d   :  { %v1172_v43 = vmul.f32 %v1143_v57, %v443_v38  ;;  %v1163_v30 = vmul.f32 %v1107_v55, %v2042_v20 }
 0x18e   :  { %v1203_v41 = vpop.permute.xlu0 %1202 }
 0x18f   :  { %v2249_v2 = vadd.f32 %v1172_v43, %v1092_v19  ;;  %v1259_v58 = vmul.f32 %v1203_v41, %v2089_v25  ;;  %v1179_v21 = vadd.f32 %v1163_v30, %v2118_v13  ;;  %v2264_v25 = vpop.f32.mrf.mxu3  ;;  %v1066_v13 = vmul.f32 %v2163_v59, %v2016_v37 }
 0x190   :  { %v1162_v43 = vmul.f32 %v2177_v50, %v2027_v35 }
 0x191   :  { %v1275_v7 = vadd.f32 %v1259_v58, %v1179_v21  ;;  %v1082_v55 = vadd.f32 %v1066_v13, %v2025_v45 }
 0x193   :  { %v1295_v38 = vadd.f32 %v2256_v54, %v1275_v7  ;;  %v1178_v58 = vadd.f32 %v1162_v43, %v1082_v55 }
 0x194   :  { %v1155_v27 = vpop.permute.xlu2 %1154  ;;  %v1115_v57 = vpop.permute.xlu1 %1114 }
 0x195   :  { %v1175_v4 = vmul.f32 %v1155_v27, %v451_v29  ;;  %1311 = vst [vmem:[%s2376_s3 + $0x10] sm:$0xff] %v1295_v38  ;;  %v1165_v59 = vmul.f32 %v1115_v57, %v2072_v28 }
 0x196   :  { %v1223_v19 = vpop.permute.xlu0 %1222 }
 0x197   :  { %v2262_v20 = vadd.f32 %v1175_v4, %v1095_v33  ;;  %v1264_v33 = vmul.f32 %v1223_v19, %v2205_v15  ;;  %v495_v37 = vpop.f32.mrf.mxu3 }
 0x19c   :  { %v1127_v30 = vpop.permute.xlu1 %1126 }
 0x19d   :  { %v1199_v41 = vpop.permute.xlu2 %1198  ;;  %v1168_v21 = vmul.f32 %v1127_v30, %v2122_v52 }
 0x19e   :  { %v1258_v7 = vmul.f32 %v1199_v41, %v2074_v22  ;;  %v1235_v27 = vpop.permute.xlu0 %1234  ;;  %v1071_v22 = vmul.f32 %v2194_v16, %v2091_v46  ;;  %v1167_v46 = vmul.f32 %v2197_v63, %v2103_v34 }
 0x19f   :  { %v1184_v29 = vadd.f32 %v1168_v21, %v2152_v44  ;;  %v1181_v44 = vadd.f32 %v1165_v59, %v2130_v26  ;;  %v1267_v57 = vmul.f32 %v1235_v27, %v490_v18  ;;  %v497_v30 = vpop.f32.mrf.mxu3 }
 0x1a0   :  { %v1274_v38 = vadd.f32 %v1258_v7, %v1178_v58  ;;  %v1087_v43 = vadd.f32 %v1071_v22, %v2097_v11  ;;  %v1074_v11 = vmul.f32 %v2208_v31, %v2136_v3  ;;  %v453_v22 = vpop.f32.mrf.mxu2 }
 0x1a1   :  { %v1280_v4 = vadd.f32 %v1264_v33, %v1184_v29  ;;  %v1170_v33 = vmul.f32 %v2211_v61, %v2166_v36 }
 0x1a2   :  { %v1294_v35 = vadd.f32 %v2256_v54, %v1274_v38  ;;  %v1090_v7 = vadd.f32 %v1074_v11, %v2150_v62 }
 0x1a3   :  { %v1300_v45 = vadd.f32 %v2256_v54, %v1280_v4 }
 0x1a4   :  { %1310 = vst [vmem:[%s2376_s3 + $0x8] sm:$0xff] %v1294_v35  ;;  %v1139_v52 = vpop.permute.xlu1 %1138  ;;  %v1173_v35 = vmul.f32 %v2224_v17, %v2230_v48 }
 0x1a5   :  { %v1211_v50 = vpop.permute.xlu2 %1210  ;;  %1316 = vst [vmem:[%s2376_s3 + $0x38] sm:$0xff] %v1300_v45  ;;  %v1171_v28 = vmul.f32 %v1139_v52, %v2183_v10  ;;  %v1183_v10 = vadd.f32 %v1167_v46, %v1087_v43 }
 0x1a6   :  { %v1261_v15 = vmul.f32 %v1211_v50, %v2134_v9  ;;  %v1247_v55 = vpop.permute.xlu0 %1246 }
 0x1a7   :  { %v1187_v13 = vadd.f32 %v1171_v28, %v2168_v1  ;;  %v1270_v41 = vmul.f32 %v1247_v55, %v497_v30  ;;  %v500_v59 = vpop.f32.mrf.mxu3 }
 0x1a8   :  { %v1277_v19 = vadd.f32 %v1261_v15, %v1181_v44  ;;  %v1176_v44 = vmul.f32 %v2238_v0, %v453_v22 }
 0x1a9   :  { %v1283_v26 = vadd.f32 %v1267_v57, %v1187_v13 }
 0x1aa   :  { %v1297_v16 = vadd.f32 %v2256_v54, %v1277_v19 }
 0x1ab   :  { %v1303_v9 = vadd.f32 %v2256_v54, %v1283_v26 }
 0x1ac   :  { %1313 = vst [vmem:[%s2376_s3 + $0x20] sm:$0xff] %v1297_v16  ;;  %v1151_v18 = vpop.permute.xlu1 %1150 }
 0x1ad   :  { %v1219_v1 = vpop.permute.xlu2 %1218  ;;  %1319 = vst [vmem:[%s2376_s3 + $0x50] sm:$0xff] %v1303_v9  ;;  %v1174_v34 = vmul.f32 %v1151_v18, %v2246_v40 }
 0x1ae   :  { %v1263_v63 = vmul.f32 %v1219_v1, %v2179_v47  ;;  %v1186_v47 = vadd.f32 %v1170_v33, %v1090_v7 }
 0x1af   :  { %v1190_v58 = vadd.f32 %v1174_v34, %v2216_v32  ;;  %v1077_v32 = vmul.f32 %v2221_v5, %v2185_v39  ;;  %v502_v57 = vpop.f32.mrf.mxu3 }
 0x1b0   :  { %v1279_v21 = vadd.f32 %v1263_v63, %v1183_v10 }
 0x1b1   :  { %v1286_v3 = vadd.f32 %v1270_v41, %v1190_v58  ;;  %v1093_v4 = vadd.f32 %v1077_v32, %v2200_v49 }
 0x1b2   :  { %v1299_v29 = vadd.f32 %v2256_v54, %v1279_v21 }
 0x1b3   :  { %v1306_v31 = vadd.f32 %v2256_v54, %v1286_v3 }
 0x1b4   :  { %1315 = vst [vmem:[%s2376_s3 + $0x30] sm:$0xff] %v1299_v29 }
 0x1b5   :  { %v1231_v40 = vpop.permute.xlu2 %1230  ;;  %1322 = vst [vmem:[%s2376_s3 + $0x68] sm:$0xff] %v1306_v31  ;;  %v1195_v36 = vpop.permute.xlu1 %1194 }
 0x1b6   :  { %v1266_v62 = vmul.f32 %v1231_v40, %v2232_v56  ;;  %v1257_v61 = vmul.f32 %v1195_v36, %v2060_v42  ;;  %v404_v56 = vpop.f32.mrf.mxu1 }
 0x1b7   :  { %v1080_v48 = vmul.f32 %v2235_v24, %v404_v56 }
 0x1b8   :  { %v1282_v38 = vadd.f32 %v1266_v62, %v1186_v47  ;;  %v1273_v27 = vadd.f32 %v1257_v61, %v2203_v23  ;;  %v1189_v23 = vadd.f32 %v1173_v35, %v1093_v4 }
 0x1b9   :  { %v1096_v13 = vadd.f32 %v1080_v48, %v2241_v12 }
 0x1ba   :  { %v1302_v39 = vadd.f32 %v2256_v54, %v1282_v38  ;;  %v1293_v5 = vadd.f32 %v2256_v54, %v1273_v27 }
 0x1bb   :  { %v1192_v24 = vadd.f32 %v1176_v44, %v1096_v13 }
 0x1bc   :  { %1318 = vst [vmem:[%s2376_s3 + $0x48] sm:$0xff] %v1302_v39 }
 0x1bd   :  { %1309 = vst [vmem:[%s2376_s3] sm:$0xff] %v1293_v5  ;;  %v1243_v42 = vpop.permute.xlu2 %1242  ;;  %v1207_v49 = vpop.permute.xlu1 %1206 }
 0x1be   :  { %v1269_v45 = vmul.f32 %v1243_v42, %v495_v37  ;;  %v1260_v17 = vmul.f32 %v1207_v49, %v2115_v51 }
 0x1c0   :  { %v1285_v52 = vadd.f32 %v1269_v45, %v1189_v23  ;;  %v1276_v50 = vadd.f32 %v1260_v17, %v2214_v6 }
 0x1c2   :  { %v1305_v28 = vadd.f32 %v2256_v54, %v1285_v52  ;;  %v1296_v15 = vadd.f32 %v2256_v54, %v1276_v50 }
 0x1c4   :  { %1321 = vst [vmem:[%s2376_s3 + $0x60] sm:$0xff] %v1305_v28 }
 0x1c5   :  { %1312 = vst [vmem:[%s2376_s3 + $0x18] sm:$0xff] %v1296_v15  ;;  %v1255_v51 = vpop.permute.xlu2 %1254  ;;  %v1215_v6 = vpop.permute.xlu1 %1214 }
 0x1c6   :  { %v1272_v37 = vmul.f32 %v1255_v51, %v502_v57  ;;  %v1262_v0 = vmul.f32 %v1215_v6, %v2154_v8 }
 0x1c8   :  { %v1288_v19 = vadd.f32 %v1272_v37, %v1192_v24  ;;  %v1278_v43 = vadd.f32 %v1262_v0, %v2228_v60 }
 0x1ca   :  { %v1308_v46 = vadd.f32 %v2256_v54, %v1288_v19  ;;  %v1298_v12 = vadd.f32 %v2256_v54, %v1278_v43 }
 0x1cc   :  { %1324 = vst [vmem:[%s2376_s3 + $0x78] sm:$0xff] %v1308_v46 }
 0x1cd   :  { %1314 = vst [vmem:[%s2376_s3 + $0x28] sm:$0xff] %v1298_v12  ;;  %v1227_v16 = vpop.permute.xlu1 %1226 }
 0x1ce   :  { %v1265_v26 = vmul.f32 %v1227_v16, %v2218_v14 }
 0x1d0   :  { %v1281_v8 = vadd.f32 %v1265_v26, %v2244_v53 }
 0x1d2   :  { %v1301_v55 = vadd.f32 %v2256_v54, %v1281_v8 }
 0x1d4   :  { %1317 = vst [vmem:[%s2376_s3 + $0x40] sm:$0xff] %v1301_v55 }
 0x1d5   :  { %v1239_v60 = vpop.permute.xlu1 %1238 }
 0x1d6   :  { %v1268_v30 = vmul.f32 %v1239_v60, %v2264_v25 }
 0x1d8   :  { %v1284_v9 = vadd.f32 %v1268_v30, %v2249_v2 }
 0x1da   :  { %v1304_v10 = vadd.f32 %v2256_v54, %v1284_v9 }
 0x1dc   :  { %1320 = vst [vmem:[%s2376_s3 + $0x58] sm:$0xff] %v1304_v10 }
 0x1dd   :  { %v1251_v14 = vpop.permute.xlu1 %1250 }
 0x1de   :  { %v1271_v18 = vmul.f32 %v1251_v14, %v500_v59 }
 0x1e0   :  { %v1287_v53 = vadd.f32 %v1271_v18, %v2262_v20 }
 0x1e2   :  { %v1307_v1 = vadd.f32 %v2256_v54, %v1287_v53 }
 0x1e4   :  { %1323 = vst [vmem:[%s2376_s3 + $0x70] sm:$0xff] %v1307_v1 }

</bundles_post_ra>
